<compile_context>
chip_gen: v6e
topology: v6e:2x2x1
jax: 0.10.0
libtpu: 0.0.40
codegen_flags: <defaults>
</compile_context>

<pallas_src>
import functools

import jax
import jax.numpy as jnp
from jax import lax
from jax.experimental import pallas as pl
from jax.experimental.pallas import tpu as pltpu

_IN, _H1, _H2, _OUT = 8, 16, 8, 4
_PACK = 128 // _IN                 # 16 samples packed per 128-lane row
_CHUNK_ROWS = 128                  # rows per in-kernel compute chunk (2048 samples)
_GRANULE = _PACK * _CHUNK_ROWS     # 2048-sample tile granularity for large tiles
_W_ROWS, _W_COLS = 512, 256        # packed block-diagonal weight slab (bf16)


def mlp_kernel(x_ref, w_ref, b_ref, o_ref):
    """x_ref: (R, 128) f32 (16 samples/row)  ->  o_ref: (R, 64) f32 (16 samples/row)."""
    rows = x_ref.shape[0]                                   # static
    ch = rows if rows < _CHUNK_ROWS else _CHUNK_ROWS        # wrapper guarantees rows % ch == 0
    n_chunks = rows // ch

    def body(c, carry):
        r0 = pl.multiple_of(c * ch, ch)
        # Per-chunk loads keep register pressure low (vld slack is plentiful).
        w1 = w_ref[0:128, :]                                # (128, 256) bf16  block-diag W1.T
        w2 = w_ref[128:384, 0:128]                          # (256, 128) bf16  block-diag W2.T
        w3 = w_ref[384:512, 0:64]                           # (128, 64)  bf16  block-diag W3.T
        b1 = b_ref[0:1, 0:256]                              # (1, 256) f32
        b2 = b_ref[1:2, 0:128]                              # (1, 128) f32
        b3 = b_ref[2:3, 0:64]                               # (1, 64)  f32

        x = x_ref[pl.ds(r0, ch), :].astype(jnp.bfloat16)    # (ch, 128)
        # Linear(8,16) + ReLU   (bf16 operands, f32 MXU accumulation)
        h1 = jnp.dot(x, w1, preferred_element_type=jnp.float32) + b1
        h1 = jnp.maximum(h1, 0.0).astype(jnp.bfloat16)      # (ch, 256) = 16 samples x 16 feats
        # Linear(16,8) + outer ReLU from forward()
        h2 = jnp.dot(h1, w2, preferred_element_type=jnp.float32) + b2
        h2 = jnp.maximum(h2, 0.0).astype(jnp.bfloat16)      # (ch, 128) = 16 samples x 8 feats
        # Linear(8,4)  (self.out)
        y = jnp.dot(h2, w3, preferred_element_type=jnp.float32) + b3   # (ch, 64)
        o_ref[pl.ds(r0, ch), :] = y.astype(o_ref.dtype)
        return carry

    lax.fori_loop(0, n_chunks, body, 0)


def _block_diag16(w):
    """w: (out, in) -> 16 diagonal copies of w.T as a (16*in, 16*out) matrix."""
    wt = w.T
    din, dout = wt.shape
    eye = jnp.eye(_PACK, dtype=wt.dtype)
    return jnp.einsum("pq,io->piqo", eye, wt).reshape(_PACK * din, _PACK * dout)


def pack_params(w1, b1, w2, b2, w3, b3):
    """w_i: (out, in) f32 (PyTorch layout), b_i: (out,) f32 -> (wpack bf16, bpack f32)."""
    wp = jnp.zeros((_W_ROWS, _W_COLS), jnp.float32)
    wp = wp.at[0:128, 0:256].set(_block_diag16(w1))      # Linear(8, 16)
    wp = wp.at[128:384, 0:128].set(_block_diag16(w2))    # Linear(16, 8)
    wp = wp.at[384:512, 0:64].set(_block_diag16(w3))     # Linear(8, 4)  (self.out)
    bp = jnp.zeros((8, 256), jnp.float32)
    bp = bp.at[0, 0:256].set(jnp.tile(b1, _PACK))
    bp = bp.at[1, 0:128].set(jnp.tile(b2, _PACK))
    bp = bp.at[2, 0:64].set(jnp.tile(b3, _PACK))
    return wp.astype(jnp.bfloat16), bp


@functools.partial(jax.jit, static_argnames=("tile_b",))
def net_forward(x, wpack, bpack, *, tile_b=131072):
    """Net.forward.  x: (B, 8) f32  ->  (B, 4) f32."""
    B = x.shape[0]
    # Batch tile (in samples): big enough to amortize per-step overhead, rounded so
    # the packed block has legal (8,128)-aligned shape, clamped to the batch itself.
    tb = max(128, min(int(tile_b), pl.cdiv(B, 128) * 128))
    tb = (tb // _GRANULE) * _GRANULE if tb >= _GRANULE else (tb // 128) * 128
    Bp = pl.cdiv(B, tb) * tb
    # v7x: if a single large tile would cover the whole batch, split it so the
    # ("parallel",) grid axis feeds both TensorCores (neutral on v5e/v6e).
    if Bp == tb and tb >= 2 * _GRANULE:
        tb = (tb // (2 * _GRANULE)) * _GRANULE
        Bp = pl.cdiv(B, tb) * tb

    if Bp != B:
        x = jnp.pad(x, ((0, Bp - B), (0, 0)))            # zero rows, sliced off below
    xp = x.reshape(Bp // _PACK, _PACK * _IN)             # (Bp/16, 128): bitcast, no copy
    R = tb // _PACK                                      # rows per grid step

    yp = pl.pallas_call(
        mlp_kernel,
        out_shape=jax.ShapeDtypeStruct((Bp // _PACK, _PACK * _OUT), jnp.float32),
        grid_spec=pltpu.PrefetchScalarGridSpec(
            num_scalar_prefetch=0,
            grid=(Bp // tb,),
            in_specs=[
                pl.BlockSpec((R, _PACK * _IN), lambda i: (i, 0)),       # x: streamed
                pl.BlockSpec((_W_ROWS, _W_COLS), lambda i: (0, 0)),     # weights: resident
                pl.BlockSpec((8, 256), lambda i: (0, 0)),               # biases: resident
            ],
            out_specs=pl.BlockSpec((R, _PACK * _OUT), lambda i: (i, 0)),
        ),
        compiler_params=pltpu.CompilerParams(
            dimension_semantics=("parallel",),   # shard batch tiles across v7x's 2 TCs
        ),
    )(xp, wpack, bpack)

    y = yp.reshape(Bp, _OUT)                             # bitcast back to (Bp, 4)
    return y if Bp == B else y[:B]


def init_linear(key, fan_in, fan_out):
    # Deterministic analogue of torch.nn.Linear default init: U(-1/sqrt(fan_in), +).
    kw, kb = jax.random.split(key)
    bound = 1.0 / (fan_in ** 0.5)
    w = jax.random.uniform(kw, (fan_out, fan_in), jnp.float32, -bound, bound)  # (out, in)
    b = jax.random.uniform(kb, (fan_out,), jnp.float32, -bound, bound)
    return w, b


def ref_forward(x, w1, b1, w2, b2, w3, b3):
    # Plain-JAX reference using the same bf16-operand / f32-accumulate math.
    bf = jnp.bfloat16
    h1 = jnp.maximum(jnp.dot(x.astype(bf), w1.T.astype(bf),
                             preferred_element_type=jnp.float32) + b1, 0.0)
    h2 = jnp.maximum(jnp.dot(h1.astype(bf), w2.T.astype(bf),
                             preferred_element_type=jnp.float32) + b2, 0.0)
    return jnp.dot(h2.astype(bf), w3.T.astype(bf),
                   preferred_element_type=jnp.float32) + b3


if __name__ == "__main__":
    key = jax.random.PRNGKey(0)
    kx, k1, k2, k3 = jax.random.split(key, 4)

    w1, b1 = init_linear(k1, _IN, _H1)     # Linear(8, 16)
    w2, b2 = init_linear(k2, _H1, _H2)     # Linear(16, 8)
    w3, b3 = init_linear(k3, _H2, _OUT)    # Linear(8, 4)  (self.out)
    wpack, bpack = pack_params(w1, b1, w2, b2, w3, b3)

    # (batch, tile_b): single-step / padded multi-step / big-tile (>=2 steps + chunk loop)
    configs = [(512, None), (300, 128), (8192, 8192)]
    for batch, tile in configs:
        x = jax.random.normal(kx, (batch, _IN), jnp.float32)
        if tile is None:
            out = net_forward(x, wpack, bpack)
        else:
            out = net_forward(x, wpack, bpack, tile_b=tile)
        jax.block_until_ready(out)

        ref = ref_forward(x, w1, b1, w2, b2, w3, b3)
        assert out.shape == (batch, _OUT)
        err = float(jnp.max(jnp.abs(out - ref)))
        assert jnp.allclose(out, ref, atol=1e-2, rtol=1e-2), err

    print("KERNEL_OK")
</pallas_src>

<mosaic_0001>
module attributes {stable_mosaic.version = 11 : i64} {
  func.func @mlp_kernel(%arg0: i32, %arg1: memref<32x128xf32, #tpu.memory_space<vmem>>, %arg2: memref<512x256xbf16, #tpu.memory_space<vmem>>, %arg3: memref<8x256xf32, #tpu.memory_space<vmem>>, %arg4: memref<32x64xf32, #tpu.memory_space<vmem>>) attributes {dimension_semantics = [#tpu.dimension_semantics<parallel>], iteration_bounds = array<i64: 1>, scalar_prefetch = 0 : i64, scratch_operands = 0 : i64, tpu.core_type = #tpu.core_type<tc>, window_params = [{transform_indices = @transform_0, window_bounds = array<i64: 32, 128>}, {pipeline_mode = #tpu.pipeline_mode<synchronous>, transform_indices = @transform_1, window_bounds = array<i64: 512, 256>}, {pipeline_mode = #tpu.pipeline_mode<synchronous>, transform_indices = @transform_2, window_bounds = array<i64: 8, 256>}, {transform_indices = @transform_3, window_bounds = array<i64: 32, 64>}]} {
    %c0_i32 = arith.constant 0 : i32
    %c32_i32 = arith.constant 32 : i32
    %0 = arith.muli %c0_i32, %c32_i32 : i32
    %1 = tpu.assume_multiple %0, 32 : i32
    %c0 = arith.constant 0 : index
    %c0_0 = arith.constant 0 : index
    %2 = vector.load %arg2[%c0, %c0_0] : memref<512x256xbf16, #tpu.memory_space<vmem>>, vector<128x256xbf16>
    %c128 = arith.constant 128 : index
    %c0_1 = arith.constant 0 : index
    %3 = vector.load %arg2[%c128, %c0_1] : memref<512x256xbf16, #tpu.memory_space<vmem>>, vector<256x128xbf16>
    %c384 = arith.constant 384 : index
    %c0_2 = arith.constant 0 : index
    %4 = vector.load %arg2[%c384, %c0_2] : memref<512x256xbf16, #tpu.memory_space<vmem>>, vector<128x64xbf16>
    %c0_3 = arith.constant 0 : index
    %c0_4 = arith.constant 0 : index
    %5 = vector.load %arg3[%c0_3, %c0_4] : memref<8x256xf32, #tpu.memory_space<vmem>>, vector<1x256xf32>
    %c1 = arith.constant 1 : index
    %c0_5 = arith.constant 0 : index
    %6 = vector.load %arg3[%c1, %c0_5] : memref<8x256xf32, #tpu.memory_space<vmem>>, vector<1x128xf32>
    %c2 = arith.constant 2 : index
    %c0_6 = arith.constant 0 : index
    %7 = vector.load %arg3[%c2, %c0_6] : memref<8x256xf32, #tpu.memory_space<vmem>>, vector<1x64xf32>
    %8 = arith.index_cast %1 : i32 to index
    %c0_7 = arith.constant 0 : index
    %9 = vector.load %arg1[%8, %c0_7] : memref<32x128xf32, #tpu.memory_space<vmem>>, vector<32x128xf32>
    %10 = arith.truncf %9 : vector<32x128xf32> to vector<32x128xbf16>
    %cst = arith.constant dense<0.000000e+00> : vector<32x256xf32>
    %11 = tpu.matmul %10, %2, %cst {dimension_numbers = #tpu.dot_dimension_numbers<[1], [0], [0], [1], [0, 0, 1, 1], [], []>} : vector<32x128xbf16>, vector<128x256xbf16>, vector<32x256xf32> -> vector<32x256xf32>
    %12 = vector.broadcast %5 : vector<1x256xf32> to vector<32x256xf32>
    %13 = arith.addf %11, %12 : vector<32x256xf32>
    %cst_8 = arith.constant 0.000000e+00 : f32
    %14 = vector.broadcast %cst_8 : f32 to vector<32x256xf32>
    %15 = arith.maximumf %13, %14 : vector<32x256xf32>
    %16 = arith.truncf %15 : vector<32x256xf32> to vector<32x256xbf16>
    %cst_9 = arith.constant dense<0.000000e+00> : vector<32x128xf32>
    %17 = tpu.matmul %16, %3, %cst_9 {dimension_numbers = #tpu.dot_dimension_numbers<[1], [0], [0], [1], [0, 0, 1, 1], [], []>} : vector<32x256xbf16>, vector<256x128xbf16>, vector<32x128xf32> -> vector<32x128xf32>
    %18 = vector.broadcast %6 : vector<1x128xf32> to vector<32x128xf32>
    %19 = arith.addf %17, %18 : vector<32x128xf32>
    %cst_10 = arith.constant 0.000000e+00 : f32
    %20 = vector.broadcast %cst_10 : f32 to vector<32x128xf32>
    %21 = arith.maximumf %19, %20 : vector<32x128xf32>
    %22 = arith.truncf %21 : vector<32x128xf32> to vector<32x128xbf16>
    %cst_11 = arith.constant dense<0.000000e+00> : vector<32x64xf32>
    %23 = tpu.matmul %22, %4, %cst_11 {dimension_numbers = #tpu.dot_dimension_numbers<[1], [0], [0], [1], [0, 0, 1, 1], [], []>} : vector<32x128xbf16>, vector<128x64xbf16>, vector<32x64xf32> -> vector<32x64xf32>
    %24 = vector.broadcast %7 : vector<1x64xf32> to vector<32x64xf32>
    %25 = arith.addf %23, %24 : vector<32x64xf32>
    %26 = arith.index_cast %1 : i32 to index
    %c0_12 = arith.constant 0 : index
    %27 = vector.load %arg4[%26, %c0_12] : memref<32x64xf32, #tpu.memory_space<vmem>>, vector<32x64xf32>
    tpu.vector_store %arg4[%26, %c0_12], %25 {strides = array<i32>} : memref<32x64xf32, #tpu.memory_space<vmem>>, vector<32x64xf32>,
    %c1_i32 = arith.constant 1 : i32
    return
  }
  func.func @transform_0(%arg0: i32) -> (i32, i32) {
    %c0_i32 = arith.constant 0 : i32
    %c0_i32_0 = arith.constant 0 : i32
    return %arg0, %c0_i32 : i32, i32
  }
  func.func @transform_1(%arg0: i32) -> (i32, i32) {
    %c0_i32 = arith.constant 0 : i32
    %c0_i32_0 = arith.constant 0 : i32
    %c0_i32_1 = arith.constant 0 : i32
    return %c0_i32, %c0_i32_0 : i32, i32
  }
  func.func @transform_2(%arg0: i32) -> (i32, i32) {
    %c0_i32 = arith.constant 0 : i32
    %c0_i32_0 = arith.constant 0 : i32
    %c0_i32_1 = arith.constant 0 : i32
    return %c0_i32, %c0_i32_0 : i32, i32
  }
  func.func @transform_3(%arg0: i32) -> (i32, i32) {
    %c0_i32 = arith.constant 0 : i32
    %c0_i32_0 = arith.constant 0 : i32
    return %arg0, %c0_i32 : i32, i32
  }
}

</mosaic_0001>

<bundles_post_ra>
// kernel: net_forward.1
= control target key start
LH: loop header
LB: loop body
LE: loop exit
PB: predicated region body
PF: predicated region fallthrough
CT: control target
= control target key end

     0   :  { %v648_v1 = vmov 0   ;;  %v89_v42 = vlaneseq  ;;  %vm492_vm0 = vcmask 523264   ;;  %s822_s1 = inlined_call_operand.vmem [shape: bf16[512,256], index: 1, kind: input, shape index: {}]   ;;  %s823_s0 = inlined_call_operand.vmem [shape: f32[32,128], index: 0, kind: input, shape index: {}]   ;;  %s824_s2 = inlined_call_operand.vmem [shape: f32[8,256], index: 2, kind: input, shape index: {}]   ;;  %s825_s3 = inlined_call_operand.vmem [shape: f32[32,64], index: 3, kind: output, shape index: {}]  }
   0x1   :  { %v600_v0 = vld [vmem:[%s822_s1 + $0x74] ss:$8 sps:$4 sm:$0xff]   ;;  %211 = vmatprep.mubr.bf16.mxu0 %v648_v1  ;;  %v602_v2 = vld [vmem:[%s822_s1 + $0x70] ss:$8 sps:$4 sm:$0xff]   ;;  %v603_v3 = vld [vmem:[%s822_s1 + $0x64] ss:$8 sps:$4 sm:$0xff]  }
   0x2   :  { %179 = vmatprep.subr.bf16.mxu0 %v600_v0  ;;  %v605_v4 = vld [vmem:[%s822_s1 + $0x60] ss:$8 sps:$4 sm:$0xff]   ;;  %v606_v5 = vld [vmem:[%s822_s1 + $0x54] ss:$8 sps:$4 sm:$0xff]   ;;  %v608_v6 = vld [vmem:[%s822_s1 + $0x50] ss:$8 sps:$4 sm:$0xff]  }
   0x3   :  { %180 = vmatpush1.bf16.msra.mxu0 %v602_v2  ;;  %v609_v7 = vld [vmem:[%s822_s1 + $0x44] ss:$8 sps:$4 sm:$0xff]   ;;  %v611_v8 = vld [vmem:[%s822_s1 + $0x40] ss:$8 sps:$4 sm:$0xff]   ;;  %v612_v9 = vld [vmem:[%s822_s1 + $0x34] ss:$8 sps:$4 sm:$0xff]  }
   0x4   :  { %181 = vmatprep.subr.bf16.mxu0 %v603_v3  ;;  %v624_v10 = vld [vmem:[%s822_s1 + $0x170] ss:$8 sps:$4 sm:$0xff]   ;;  %v615_v13 = vld [vmem:[%s822_s1 + $0x24] ss:$8 sps:$4 sm:$0xff]   ;;  %v626_v14 = vld [vmem:[%s822_s1 + $0x160] ss:$8 sps:$4 sm:$0xff]  }
   0x5   :  { %v614_v11 = vld [vmem:[%s822_s1 + $0x30] ss:$8 sps:$4 sm:$0xff]   ;;  %541 = vmatprep.subr.bf16.mxu1 %v624_v10  ;;  %v627_v15 = vld [vmem:[%s822_s1 + $0xe0] ss:$8 sps:$4 sm:$0xff]   ;;  %v618_v18 = vld [vmem:[%s822_s1 + $0x14] ss:$8 sps:$4 sm:$0xff]  }
   0x6   :  { %v625_v12 = vld [vmem:[%s822_s1 + $0xf0] ss:$8 sps:$4 sm:$0xff]   ;;  %v617_v17 = vld [vmem:[%s822_s1 + $0x20] ss:$8 sps:$4 sm:$0xff]   ;;  %v621_v22 = vld [vmem:[%s822_s1 + $0x4] ss:$8 sps:$4 sm:$0xff]  }
   0x7   :  { %182 = vmatpush1.bf16.msra.mxu0 %v605_v4  ;;  %542 = vmatpush3.bf16.msra.mxu1 %v625_v12  ;;  %v628_v16 = vld [vmem:[%s822_s1 + $0x150] ss:$8 sps:$4 sm:$0xff]   ;;  %v630_v20 = vld [vmem:[%s822_s1 + $0x140] ss:$8 sps:$4 sm:$0xff]   ;;  %v90_v43 = vshrl.u32 %v89_v42, 7 }
   0x8   :  { %183 = vmatprep.subr.bf16.mxu0 %v606_v5  ;;  %543 = vmatprep.subr.bf16.mxu1 %v626_v14  ;;  %v629_v19 = vld [vmem:[%s822_s1 + $0xd0] ss:$8 sps:$4 sm:$0xff]   ;;  %v631_v23 = vld [vmem:[%s822_s1 + $0xc0] ss:$8 sps:$4 sm:$0xff]  }
   0x9   :  { %v620_v21 = vld [vmem:[%s822_s1 + $0x10] ss:$8 sps:$4 sm:$0xff]   ;;  %v623_v25 = vld [vmem:[%s822_s1] ss:$8 sps:$4 sm:$0xff]   ;;  %v95_v44 = vsub.s32 1, %v90_v43  ;;  %v91_v45 = vsub.s32 0, %v90_v43 }
   0xa   :  { %v632_v24 = vld [vmem:[%s822_s1 + $0x130] ss:$8 sps:$4 sm:$0xff]   ;;  %v82_v26 = vld [vmem:[%s823_s0] sm:$0xff]  ;;  %v83_v27 = vld [vmem:[%s823_s0 + $0x8] sm:$0xff] }
   0xb   :  { %184 = vmatpush1.bf16.msra.mxu0 %v608_v6  ;;  %544 = vmatpush3.bf16.msra.mxu1 %v627_v15  ;;  %v633_v28 = vld [vmem:[%s822_s1 + $0xb0] ss:$8 sps:$4 sm:$0xff]   ;;  %v86_v29 = vpack.c.bf16 %v83_v27, %v82_v26  ;;  %v634_v33 = vld [vmem:[%s822_s1 + $0x120] ss:$8 sps:$4 sm:$0xff]  }
   0xc   :  { %185 = vmatprep.subr.bf16.mxu0 %v609_v7  ;;  %545 = vmatprep.subr.bf16.mxu1 %v628_v16  ;;  %v84_v30 = vld [vmem:[%s823_s0 + $0x10] sm:$0xff]  ;;  %v85_v31 = vld [vmem:[%s823_s0 + $0x18] sm:$0xff]  ;;  %v635_v34 = vld [vmem:[%s822_s1 + $0xa0] ss:$8 sps:$4 sm:$0xff]  }
   0xd   :  { %v87_v32 = vpack.c.bf16 %v85_v31, %v84_v30  ;;  %v636_v35 = vld [vmem:[%s822_s1 + $0x110] ss:$8 sps:$4 sm:$0xff]   ;;  %v638_v37 = vld [vmem:[%s822_s1 + $0x100] ss:$8 sps:$4 sm:$0xff]  }
   0xe   :  { %v637_v36 = vld [vmem:[%s822_s1 + $0x90] ss:$8 sps:$4 sm:$0xff]   ;;  %v639_v38 = vld [vmem:[%s822_s1 + $0x80] ss:$8 sps:$4 sm:$0xff]  }
   0xf   :  { %186 = vmatpush1.bf16.msra.mxu0 %v611_v8  ;;  %546 = vmatpush3.bf16.msra.mxu1 %v629_v19  ;;  %v640_v39 = vld [vmem:[%s822_s1 + $0x1f0] ss:$8 sps:$4 sm:$0xff]   ;;  %v641_v40 = vld [vmem:[%s822_s1 + $0x1e0] ss:$8 sps:$4 sm:$0xff]  }
  0x10   :  { %187 = vmatprep.subr.bf16.mxu0 %v612_v9  ;;  %547 = vmatprep.subr.bf16.mxu1 %v630_v20  ;;  %v642_v41 = vld [vmem:[%s822_s1 + $0x1d0] ss:$8 sps:$4 sm:$0xff]   ;;  %v79_v46 = vld [vmem:[%s824_s2] ss:$8 sm:$0x3] }
  0x11   :  { %v96_v48 = vrot.slane %v79_v46, %v95_v44  ;;  %v92_v49 = vrot.slane %v79_v46, %v91_v45  ;;  %v644_v14 = vld [vmem:[%s822_s1 + $0x1b0] ss:$8 sps:$4 sm:$0xff]   ;;  %v645_v15 = vld [vmem:[%s822_s1 + $0x1a0] ss:$8 sps:$4 sm:$0xff]  }
  0x12   :  { %v646_v16 = vld [vmem:[%s822_s1 + $0x190] ss:$8 sps:$4 sm:$0xff]  }
  0x13   :  { %188 = vmatpush1.bf16.msra.mxu0 %v614_v11  ;;  %548 = vmatpush3.bf16.msra.mxu1 %v631_v23 }
  0x14   :  { %189 = vmatprep.subr.bf16.mxu0 %v615_v13  ;;  %549 = vmatprep.subr.bf16.mxu1 %v632_v24  ;;  %v643_v13 = vld [vmem:[%s822_s1 + $0x1c0] ss:$8 sps:$4 sm:$0xff]  }
  0x17   :  { %190 = vmatpush1.bf16.msra.mxu0 %v617_v17  ;;  %550 = vmatpush3.bf16.msra.mxu1 %v633_v28  ;;  %v647_v17 = vld [vmem:[%s822_s1 + $0x180] ss:$8 sps:$4 sm:$0xff]  }
  0x18   :  { %191 = vmatprep.subr.bf16.mxu0 %v618_v18  ;;  %551 = vmatprep.subr.bf16.mxu1 %v634_v33 }
  0x1b   :  { %192 = vmatpush1.bf16.msra.mxu0 %v620_v21  ;;  %552 = vmatpush3.bf16.msra.mxu1 %v635_v34  ;;  %v80_v21 = vld [vmem:[%s824_s2 + $0x1] ss:$0 sm:$0xff] }
  0x1c   :  { %193 = vmatprep.subr.bf16.mxu0 %v621_v22  ;;  %553 = vmatprep.subr.bf16.mxu1 %v636_v35 }
  0x1f   :  { %194 = vmatpush1.bf16.msra.mxu0 %v623_v25  ;;  %554 = vmatpush3.bf16.msra.mxu1 %v637_v36 }
  0x20   :  { %555 = vmatprep.subr.bf16.mxu1 %v638_v37  ;;  %579 = vmatprep.subr.bf16.mxu0 %v640_v39 }
  0x22   :  { %212 = vmatmul.mubr.bf16.vlgmr.msra.gmra.mxu0 %v86_v29 }
  0x23   :  { %221 = vmatprep.mubr.bf16.mxu0 %v648_v1  ;;  %556 = vmatpush3.bf16.msra.mxu1 %v639_v38 }
  0x24   :  { %580 = vmatpush3.bf16.msra.mxu0 %v640_v39 }
  0x25   :  { %581 = vmatprep.subr.bf16.mxu0 %v641_v40 }
  0x28   :  { %582 = vmatpush3.bf16.msra.mxu0 %v641_v40 }
  0x29   :  { %583 = vmatprep.subr.bf16.mxu0 %v642_v41 }
  0x2a   :  { %222 = vmatmul.mubr.bf16.gmra.mxu0 %v87_v32 }
  0x2c   :  { %584 = vmatpush3.bf16.msra.mxu0 %v642_v41  ;;  %v81_v41 = vld [vmem:[%s824_s2 + $0x2] ss:$0 sm:$0xff] }
  0x2d   :  { %585 = vmatprep.subr.bf16.mxu0 %v643_v13 }
  0x30   :  { %586 = vmatpush3.bf16.msra.mxu0 %v643_v13 }
  0x31   :  { %587 = vmatprep.subr.bf16.mxu0 %v644_v14 }
  0x34   :  { %588 = vmatpush3.bf16.msra.mxu0 %v644_v14 }
  0x35   :  { %589 = vmatprep.subr.bf16.mxu0 %v645_v15 }
  0x38   :  { %590 = vmatpush3.bf16.msra.mxu0 %v645_v15 }
  0x39   :  { %591 = vmatprep.subr.bf16.mxu0 %v646_v16 }
  0x3c   :  { %592 = vmatpush3.bf16.msra.mxu0 %v646_v16 }
  0x3d   :  { %593 = vmatprep.subr.bf16.mxu0 %v647_v17 }
  0x40   :  { %594 = vmatpush3.bf16.msra.mxu0 %v647_v17 }
  0xe2   :  { %v213_v47 = vpop.f32.mrf.mxu0 }
  0xe3   :  { %v214_v54 = vadd.f32 %v213_v47, %v92_v49 }
  0xe4   :  { %v215_v50 = vpop.f32.mrf.mxu0 }
  0xe5   :  { %v216_v52 = vadd.f32 %v215_v50, %v96_v48  ;;  %v232_v61 = vmax.f32 %v214_v54, 0.0 }
  0xe6   :  { %v217_v51 = vpop.f32.mrf.mxu0 }
  0xe7   :  { %v218_v53 = vadd.f32 %v217_v51, %v92_v49  ;;  %v233_v59 = vmax.f32 %v216_v52, 0.0 }
  0xe8   :  { %v219_v55 = vpop.f32.mrf.mxu0 }
  0xe9   :  { %v220_v56 = vadd.f32 %v219_v55, %v96_v48  ;;  %v234_v57 = vmax.f32 %v218_v53, 0.0 }
  0xea   :  { %v223_v58 = vpop.f32.mrf.mxu0 }
  0xeb   :  { %v235_v60 = vmax.f32 %v220_v56, 0.0  ;;  %v240_v0 = vpack.c.bf16 %v234_v57, %v232_v61  ;;  %v224_v4 = vadd.f32 %v223_v58, %v92_v49 }
  0xec   :  { %v225_v62 = vpop.f32.mrf.mxu0 }
  0xed   :  { %v241_v63 = vpack.c.bf16 %v235_v60, %v233_v59  ;;  %v226_v2 = vadd.f32 %v225_v62, %v96_v48  ;;  %v236_v10 = vmax.f32 %v224_v4, 0.0 }
  0xee   :  { %v227_v1 = vpop.f32.mrf.mxu0 }
  0xef   :  { %v228_v3 = vadd.f32 %v227_v1, %v92_v49  ;;  %372 = vmatprep.mubr.bf16.mxu1 %v241_v63  ;;  %v237_v8 = vmax.f32 %v226_v2, 0.0 }
  0xf0   :  { %v229_v5 = vpop.f32.mrf.mxu0  ;;  %373 = vmatmul.mubr.bf16.vlgmr.msra.gmra.mxu1 %v240_v0 }
  0xf1   :  { %v230_v6 = vadd.f32 %v229_v5, %v96_v48  ;;  %v238_v7 = vmax.f32 %v228_v3, 0.0 }
  0xf3   :  { %v239_v9 = vmax.f32 %v230_v6, 0.0  ;;  %v242_v12 = vpack.c.bf16 %v238_v7, %v236_v10 }
  0xf5   :  { %v243_v11 = vpack.c.bf16 %v239_v9, %v237_v8 }
  0xf7   :  { %380 = vmatprep.mubr.bf16.mxu1 %v243_v11 }
  0xf8   :  { %381 = vmatmul.mubr.bf16.gmra.mxu1 %v242_v12 }
 0x1b0   :  { %v557_v18 = vpop.f32.mrf.mxu1 }
 0x1b2   :  { %v558_v19 = vpop.f32.mrf.mxu1 }
 0x1b3   :  { %v559_v20 = vadd.f32 %v558_v19, %v557_v18 }
 0x1b4   :  { %v560_v22 = vpop.f32.mrf.mxu1 }
 0x1b5   :  { %v375_v24 = vadd.f32 %v559_v20, %v80_v21 }
 0x1b6   :  { %v561_v23 = vpop.f32.mrf.mxu1 }
 0x1b7   :  { %v562_v25 = vadd.f32 %v561_v23, %v560_v22  ;;  %v389_v29 = vmax.f32 %v375_v24, 0.0 }
 0x1b8   :  { %v563_v26 = vpop.f32.mrf.mxu1 }
 0x1b9   :  { %v378_v27 = vadd.f32 %v562_v25, %v80_v21 }
 0x1ba   :  { %v564_v28 = vpop.f32.mrf.mxu1 }
 0x1bb   :  { %v390_v30 = vmax.f32 %v378_v27, 0.0  ;;  %v565_v31 = vadd.f32 %v564_v28, %v563_v26 }
 0x1bc   :  { %v566_v32 = vpop.f32.mrf.mxu1 }
 0x1bd   :  { %v393_v33 = vpack.c.bf16 %v390_v30, %v389_v29  ;;  %v383_v35 = vadd.f32 %v565_v31, %v80_v21 }
 0x1be   :  { %v567_v34 = vpop.f32.mrf.mxu1 }
 0x1bf   :  { %v568_v36 = vadd.f32 %v567_v34, %v566_v32  ;;  %595 = vmatprep.mubr.bf16.mxu0 %v393_v33  ;;  %v391_v38 = vmax.f32 %v383_v35, 0.0 }
 0x1c1   :  { %v386_v37 = vadd.f32 %v568_v36, %v80_v21 }
 0x1c3   :  { %v392_v39 = vmax.f32 %v386_v37, 0.0 }
 0x1c5   :  { %v394_v40 = vpack.c.bf16 %v392_v39, %v391_v38 }
 0x1c7   :  { %596 = vmatmul.mubr.bf16.vlgmr.msra.gmra.mxu0 %v394_v40 }
 0x287   :  { %v597_v42 = vpop.f32.mrf.mxu0 }
 0x288   :  { %v486_v43 = vadd.f32 %v597_v42, %v81_v41 }
 0x289   :  { %v477_v44 = vpop.f32.mrf.mxu0 }
 0x28a   :  { %495 = vst.msk [vmem:[%s825_s3 + $0x10] sm:$0xff] %vm492_vm0, %v486_v43  ;;  %v478_v45 = vadd.f32 %v477_v44, %v81_v41 }
 0x28b   :  { %v598_v46 = vpop.f32.mrf.mxu0 }
 0x28c   :  { %493 = vst.msk [vmem:[%s825_s3] sm:$0xff] %vm492_vm0, %v478_v45  ;;  %v489_v47 = vadd.f32 %v598_v46, %v81_v41 }
 0x28d   :  { %v480_v48 = vpop.f32.mrf.mxu0 }
 0x28e   :  { %496 = vst.msk [vmem:[%s825_s3 + $0x18] sm:$0xff] %vm492_vm0, %v489_v47  ;;  %v481_v49 = vadd.f32 %v480_v48, %v81_v41 }
 0x290   :  { %494 = vst.msk [vmem:[%s825_s3 + $0x8] sm:$0xff] %vm492_vm0, %v481_v49 }

</bundles_post_ra>
